<compile_context>
chip_gen: v5e
topology: v5e:2x2
jax: 0.10.0
libtpu: 0.0.40
codegen_flags: <defaults>
</compile_context>

<pallas_src>
import functools

import jax
import jax.numpy as jnp
from jax.experimental import pallas as pl
from jax.experimental.pallas import tpu as pltpu

_LANE = 128
_VMEM_BUDGET = 24 * 1024 * 1024   # conservative working-set budget (fits v7x)
_VMEM_LIMIT = 32 * 1024 * 1024    # scoped VMEM limit requested from Mosaic


def _round_up(x, m):
    return ((x + m - 1) // m) * m


# ----------------------------- Pallas kernels -----------------------------

def _matmul_bias_relu_kernel(p_ref, w_ref, b_ref, o_ref):
    """relu([tile_m, K]bf16 @ [K, C]bf16 (f32 acc) + bias)."""
    acc = jnp.dot(p_ref[...], w_ref[...], preferred_element_type=jnp.float32)
    o_ref[...] = jnp.maximum(acc + b_ref[...], 0.0).astype(o_ref.dtype)


def _direct3x3_kernel(x_ref, w_ref, b_ref, *rest, ho, wo, with_shortcut):
    """Direct 3x3 / stride-1 conv on one image (in-kernel halo + im2col).

    x_ref  : (1, ho, wo, Cin) bf16, *unpadded* activation
    w_ref  : (9, Cin, Cout) bf16, BN scale already folded in
    b_ref  : (1, Cout) f32
    sc_ref : optional (1, ho*wo, Cout) f32 shortcut
    o_ref  : (1, ho*wo, Cout)
    pad_ref: VMEM scratch (ho+2, wo+2, Cin) f32 — spatial halo built in-kernel
             so the activation never round-trips HBM through an XLA pad.
    """
    if with_shortcut:
        sc_ref, o_ref, pad_ref = rest
    else:
        o_ref, pad_ref = rest

    # Build the zero halo in VMEM (re-zeroed every step: no cross-iteration
    # scratch dependency, safe under megacore grid sharding).  Slicing and
    # reshaping of the taps happens in 32-bit layout; MXU operands are cast
    # back to bf16 right before each dot (values are identical).
    pad_ref[...] = jnp.zeros_like(pad_ref)
    pad_ref[1:1 + ho, 1:1 + wo, :] = x_ref[0].astype(jnp.float32)

    x = pad_ref[...]                                      # (ho+2, wo+2, Cin) f32
    cin = x.shape[-1]
    acc = None
    for kh in range(3):
        for kw in range(3):
            tap = x[kh:kh + ho, kw:kw + wo, :].reshape(ho * wo, cin)
            part = jnp.dot(tap.astype(jnp.bfloat16), w_ref[kh * 3 + kw],
                           preferred_element_type=jnp.float32)
            acc = part if acc is None else acc + part
    acc = acc + b_ref[...]
    if with_shortcut:
        acc = acc + sc_ref[0]
    o_ref[0] = jnp.maximum(acc, 0.0).astype(o_ref.dtype)


# ----------------------------- kernel wrappers ------------------------------

def _pick_tile_m(m, k, c):
    """Largest M tile (multiple of 128) whose working set fits the budget."""
    for tm in (512, 256, 128):
        if tm > max(m, 128):
            continue
        need = (k * c * 2 + 2 * c * 4      # resident bf16 weight + bias
                + 2 * tm * k * 2           # double-buffered bf16 patch tile
                + 2 * tm * c * 2)          # double-buffered output tile
        if need <= _VMEM_BUDGET:
            return tm
    # TODO(synk): add a K grid axis + f32 VMEM accumulator scratch if a full-K
    # weight block ever exceeds the budget (deepest stages on v7x's 64 MiB).
    return 128


def _conv_as_matmul(patches, w_mat, bias, *, out_dtype=jnp.bfloat16):
    """relu(patches @ w_mat + bias); patches [M, K] bf16, w_mat [K, C] bf16."""
    m, k = patches.shape
    cout = w_mat.shape[1]
    tile_m = _pick_tile_m(m, k, cout)
    m_pad = _round_up(m, tile_m)
    if m_pad != m:
        patches = jnp.pad(patches, ((0, m_pad - m), (0, 0)))
    grid = (m_pad // tile_m,)
    bytes_accessed = (m_pad * k * 2 + k * cout * 2 + cout * 4
                      + m_pad * cout * jnp.dtype(out_dtype).itemsize)
    out = pl.pallas_call(
        _matmul_bias_relu_kernel,
        out_shape=jax.ShapeDtypeStruct((m_pad, cout), out_dtype),
        grid_spec=pltpu.PrefetchScalarGridSpec(
            num_scalar_prefetch=0,
            grid=grid,
            in_specs=[
                pl.BlockSpec((tile_m, k), lambda i: (i, 0)),   # patch tile
                pl.BlockSpec((k, cout), lambda i: (0, 0)),     # full weight
                pl.BlockSpec((1, cout), lambda i: (0, 0)),     # bn bias
            ],
            out_specs=pl.BlockSpec((tile_m, cout), lambda i: (i, 0)),
        ),
        compiler_params=pltpu.CompilerParams(
            dimension_semantics=("parallel",),
            vmem_limit_bytes=_VMEM_LIMIT),
        cost_estimate=pl.CostEstimate(
            flops=2 * m_pad * k * cout, transcendentals=0,
            bytes_accessed=int(bytes_accessed)),
    )(patches, w_mat, bias)
    return out[:m] if m_pad != m else out


def _conv3x3_direct(x_nhwc, w9, bias, shortcut=None, *, out_dtype=jnp.float32):
    """Per-image direct 3x3 / stride-1 conv + bias (+ shortcut) + ReLU.

    x_nhwc is the *unpadded* activation; the spatial halo is built inside the
    kernel in a VMEM scratch.
    """
    n, h, w, cin = x_nhwc.shape
    ho, wo = h, w
    cout = w9.shape[-1]
    kernel = functools.partial(_direct3x3_kernel, ho=ho, wo=wo,
                               with_shortcut=shortcut is not None)
    in_specs = [
        pl.BlockSpec((1, h, w, cin), lambda i: (i, 0, 0, 0)),    # one image
        pl.BlockSpec((9, cin, cout), lambda i: (0, 0, 0)),       # full weights
        pl.BlockSpec((1, cout), lambda i: (0, 0)),               # bn bias
    ]
    args = [x_nhwc, w9, bias]
    if shortcut is not None:
        in_specs.append(pl.BlockSpec((1, ho * wo, cout), lambda i: (i, 0, 0)))
        args.append(shortcut)
    bytes_accessed = (sum(a.size * a.dtype.itemsize for a in args)
                      + n * ho * wo * cout * jnp.dtype(out_dtype).itemsize)
    return pl.pallas_call(
        kernel,
        out_shape=jax.ShapeDtypeStruct((n, ho * wo, cout), out_dtype),
        grid_spec=pltpu.PrefetchScalarGridSpec(
            num_scalar_prefetch=0,
            grid=(n,),
            in_specs=in_specs,
            out_specs=pl.BlockSpec((1, ho * wo, cout), lambda i: (i, 0, 0)),
            scratch_shapes=[pltpu.VMEM((h + 2, w + 2, cin), jnp.float32)],
        ),
        compiler_params=pltpu.CompilerParams(
            dimension_semantics=("parallel",),
            vmem_limit_bytes=_VMEM_LIMIT),
        cost_estimate=pl.CostEstimate(
            flops=2 * n * ho * wo * 9 * cin * cout, transcendentals=0,
            bytes_accessed=int(bytes_accessed)),
    )(*args)


# ------------------------------ JAX glue ----------------------------------

def _im2col_3x3(x_nhwc, stride):
    """x: [N, H, W, C] -> patches [N*Ho*Wo, 9*C] (kernel=3, padding=1)."""
    n, h, w, c = x_nhwc.shape
    ho = (h + 2 - 3) // stride + 1
    wo = (w + 2 - 3) // stride + 1
    xp = jnp.pad(x_nhwc, ((0, 0), (1, 1), (1, 1), (0, 0)))
    slabs = []
    for kh in range(3):
        for kw in range(3):
            slabs.append(xp[:, kh:kh + (ho - 1) * stride + 1:stride,
                            kw:kw + (wo - 1) * stride + 1:stride, :])
    patches = jnp.concatenate(slabs, axis=-1)             # [N, Ho, Wo, 9*C]
    return patches.reshape(n * ho * wo, 9 * c), (n, ho, wo)


def _prep_conv_bn(w_oihw, gamma, beta, mean, var, cin_pad, cout_pad, eps=1e-5):
    """Fold BN scale into conv weights; pad channels; bf16 weights, f32 bias."""
    cout, cin = w_oihw.shape[0], w_oihw.shape[1]
    scale = gamma / jnp.sqrt(var + eps)
    bias = beta - mean * scale
    w = jnp.transpose(w_oihw, (2, 3, 1, 0)) * scale[None, None, None, :]
    w = jnp.pad(w, ((0, 0), (0, 0), (0, cin_pad - cin), (0, cout_pad - cout)))
    w9 = w.reshape(9, cin_pad, cout_pad).astype(jnp.bfloat16)  # (9, Cin, Cout)
    bias = jnp.pad(bias, (0, cout_pad - cout))[None, :].astype(jnp.float32)
    return w9, bias


def init_params(key, in_c, c):
    ks = jax.random.split(key, 10)
    p = {}
    p["w1"] = 0.1 * jax.random.normal(ks[0], (c, in_c, 3, 3), jnp.float32)
    p["g1"] = 1.0 + 0.1 * jax.random.normal(ks[1], (c,), jnp.float32)
    p["b1"] = 0.1 * jax.random.normal(ks[2], (c,), jnp.float32)
    p["m1"] = 0.1 * jax.random.normal(ks[3], (c,), jnp.float32)
    p["v1"] = jax.random.uniform(ks[4], (c,), jnp.float32, 0.5, 1.5)
    p["w2"] = 0.1 * jax.random.normal(ks[5], (c, c, 3, 3), jnp.float32)
    p["g2"] = 1.0 + 0.1 * jax.random.normal(ks[6], (c,), jnp.float32)
    p["b2"] = 0.1 * jax.random.normal(ks[7], (c,), jnp.float32)
    p["m2"] = 0.1 * jax.random.normal(ks[8], (c,), jnp.float32)
    p["v2"] = jax.random.uniform(ks[9], (c,), jnp.float32, 0.5, 1.5)
    return p


@functools.partial(jax.jit, static_argnames=("in_c", "c", "stride"))
def basic_block_forward(x_nchw, params, *, in_c, c, stride):
    """x: [N, in_c, H, W] f32 -> [N, c, Ho, Wo] f32 (PyTorch NCHW I/O)."""
    if stride == 1 and in_c != c:
        raise ValueError("stride == 1 requires in_c == c (identity shortcut)")
    if c < in_c:
        raise ValueError("channel-pad shortcut requires c >= in_c")

    cp = _round_up(c, _LANE)                       # lane-dense output channels
    x = jnp.transpose(x_nchw, (0, 2, 3, 1))        # -> NHWC (f32)
    x_bf = x.astype(jnp.bfloat16)
    n, h, w = x.shape[0], x.shape[1], x.shape[2]

    # --- ConvBn #1 + ReLU (BN scale folded into the weights) ---
    if stride == 1:
        cin_p = _round_up(in_c, _LANE)
        x1 = jnp.pad(x_bf, ((0, 0), (0, 0), (0, 0), (0, cin_p - in_c)))
        w1, b1 = _prep_conv_bn(params["w1"], params["g1"], params["b1"],
                               params["m1"], params["v1"], cin_p, cp)
        h1 = _conv3x3_direct(x1, w1, b1, out_dtype=jnp.bfloat16)
        ho, wo = h, w
    else:
        patches1, (n, ho, wo) = _im2col_3x3(x_bf, stride)
        w1, b1 = _prep_conv_bn(params["w1"], params["g1"], params["b1"],
                               params["m1"], params["v1"], in_c, cp)
        h1 = _conv_as_matmul(patches1, w1.reshape(9 * in_c, cp), b1,
                             out_dtype=jnp.bfloat16)
    h1 = h1.reshape(n, ho, wo, cp)                 # bf16, channel-padded

    # --- shortcut (f32, channel-padded to cp; matches the module's zero pad) ---
    sc = x if stride == 1 else x[:, ::stride, ::stride, :]
    sc = jnp.pad(sc, ((0, 0), (0, 0), (0, 0), (0, cp - in_c)))
    sc = sc.reshape(n, ho * wo, cp)

    # --- ConvBn #2 + shortcut add + ReLU (direct kernel, halo built in VMEM) ---
    w2, b2 = _prep_conv_bn(params["w2"], params["g2"], params["b2"],
                           params["m2"], params["v2"], cp, cp)
    out = _conv3x3_direct(h1, w2, b2, shortcut=sc, out_dtype=jnp.float32)

    out = out.reshape(n, ho, wo, cp)[..., :c]
    return jnp.transpose(out, (0, 3, 1, 2))        # -> NCHW


# ------------------------- pure-JAX reference -----------------------------
# Mirrors the kernel's numerics (bf16 conv operands, f32 accumulation, BN
# scale folded into weights, bf16 h1) so the comparison can stay tight.

def _ref_forward(x_nchw, params, *, in_c, c, stride, eps=1e-5):
    bf = lambda a: a.astype(jnp.bfloat16)
    x = jnp.transpose(x_nchw, (0, 2, 3, 1))

    def convbn(h_bf, w_oihw, g, b, m, v, s):
        scale = g / jnp.sqrt(v + eps)
        bias = b - m * scale
        w = jnp.transpose(w_oihw, (2, 3, 1, 0)) * scale[None, None, None, :]
        y = jax.lax.conv_general_dilated(
            h_bf, bf(w), (s, s), ((1, 1), (1, 1)),
            dimension_numbers=("NHWC", "HWIO", "NHWC"),
            preferred_element_type=jnp.float32)
        return y + bias[None, None, None, :]

    h1 = jax.nn.relu(convbn(bf(x), params["w1"], params["g1"], params["b1"],
                            params["m1"], params["v1"], stride))
    h2 = convbn(bf(h1), params["w2"], params["g2"], params["b2"],
                params["m2"], params["v2"], 1)
    if stride != 1:
        sc = x[:, ::stride, ::stride, :]
        sc = jnp.pad(sc, ((0, 0), (0, 0), (0, 0), (0, c - in_c)))
    else:
        sc = x
    out = jax.nn.relu(h2 + sc)
    return jnp.transpose(out, (0, 3, 1, 2))


# --------------------------------- main ------------------------------------

if __name__ == "__main__":
    key = jax.random.PRNGKey(0)
    k_x, k_p, k_x2, k_p2 = jax.random.split(key, 4)

    # Downsampling block: stride 2 + channel expansion (im2col matmul kernel
    # for conv1, direct kernel with fused shortcut for conv2).
    N, IN_C, C, H, W, STRIDE = 2, 4, 8, 16, 16, 2
    x = jax.random.normal(k_x, (N, IN_C, H, W), jnp.float32)
    params = init_params(k_p, IN_C, C)
    out = jax.block_until_ready(
        basic_block_forward(x, params, in_c=IN_C, c=C, stride=STRIDE))
    ref = _ref_forward(x, params, in_c=IN_C, c=C, stride=STRIDE)
    assert out.shape == (N, C, H // STRIDE, W // STRIDE), out.shape
    err = float(jnp.max(jnp.abs(out - ref)))
    assert jnp.allclose(out, ref, atol=1e-2, rtol=1e-2), err

    # Identity block: stride 1, in_c == c (direct kernel for both convs,
    # without and with the fused shortcut add).
    N2, C2, H2, W2 = 2, 8, 16, 16
    x2 = jax.random.normal(k_x2, (N2, C2, H2, W2), jnp.float32)
    params2 = init_params(k_p2, C2, C2)
    out2 = jax.block_until_ready(
        basic_block_forward(x2, params2, in_c=C2, c=C2, stride=1))
    ref2 = _ref_forward(x2, params2, in_c=C2, c=C2, stride=1)
    assert out2.shape == (N2, C2, H2, W2), out2.shape
    err2 = float(jnp.max(jnp.abs(out2 - ref2)))
    assert jnp.allclose(out2, ref2, atol=1e-2, rtol=1e-2), err2

    print("KERNEL_OK")
</pallas_src>

<mosaic_0001>
module attributes {stable_mosaic.version = 11 : i64} {
  func.func @_matmul_bias_relu_kernel(%arg0: i32, %arg1: memref<128x36xbf16, #tpu.memory_space<vmem>>, %arg2: memref<36x128xbf16, #tpu.memory_space<vmem>>, %arg3: memref<1x128xf32, #tpu.memory_space<vmem>>, %arg4: memref<128x128xbf16, #tpu.memory_space<vmem>>) attributes {dimension_semantics = [#tpu.dimension_semantics<parallel>], iteration_bounds = array<i64: 1>, scalar_prefetch = 0 : i64, scratch_operands = 0 : i64, tpu.core_type = #tpu.core_type<tc>, window_params = [{transform_indices = @transform_0, window_bounds = array<i64: 128, 36>}, {pipeline_mode = #tpu.pipeline_mode<synchronous>, transform_indices = @transform_1, window_bounds = array<i64: 36, 128>}, {pipeline_mode = #tpu.pipeline_mode<synchronous>, transform_indices = @transform_2, window_bounds = array<i64: 1, 128>}, {transform_indices = @transform_3, window_bounds = array<i64: 128, 128>}]} {
    %c0 = arith.constant 0 : index
    %c0_0 = arith.constant 0 : index
    %0 = vector.load %arg1[%c0, %c0_0] : memref<128x36xbf16, #tpu.memory_space<vmem>>, vector<128x36xbf16>
    %c0_1 = arith.constant 0 : index
    %c0_2 = arith.constant 0 : index
    %1 = vector.load %arg2[%c0_1, %c0_2] : memref<36x128xbf16, #tpu.memory_space<vmem>>, vector<36x128xbf16>
    %cst = arith.constant dense<0.000000e+00> : vector<128x128xf32>
    %2 = tpu.matmul %0, %1, %cst {dimension_numbers = #tpu.dot_dimension_numbers<[1], [0], [0], [1], [0, 0, 1, 1], [], []>} : vector<128x36xbf16>, vector<36x128xbf16>, vector<128x128xf32> -> vector<128x128xf32>
    %c0_3 = arith.constant 0 : index
    %c0_4 = arith.constant 0 : index
    %3 = vector.load %arg3[%c0_3, %c0_4] : memref<1x128xf32, #tpu.memory_space<vmem>>, vector<1x128xf32>
    %4 = vector.broadcast %3 : vector<1x128xf32> to vector<128x128xf32>
    %5 = arith.addf %2, %4 : vector<128x128xf32>
    %cst_5 = arith.constant 0.000000e+00 : f32
    %6 = vector.broadcast %cst_5 : f32 to vector<128x128xf32>
    %7 = arith.maximumf %5, %6 : vector<128x128xf32>
    %8 = arith.truncf %7 : vector<128x128xf32> to vector<128x128xbf16>
    %c0_6 = arith.constant 0 : index
    %c0_7 = arith.constant 0 : index
    %9 = vector.load %arg4[%c0_6, %c0_7] : memref<128x128xbf16, #tpu.memory_space<vmem>>, vector<128x128xbf16>
    tpu.vector_store %arg4[%c0_6, %c0_7], %8 {strides = array<i32>} : memref<128x128xbf16, #tpu.memory_space<vmem>>, vector<128x128xbf16>,
    return
  }
  func.func @transform_0(%arg0: i32) -> (i32, i32) {
    %c0_i32 = arith.constant 0 : i32
    %c0_i32_0 = arith.constant 0 : i32
    return %arg0, %c0_i32 : i32, i32
  }
  func.func @transform_1(%arg0: i32) -> (i32, i32) {
    %c0_i32 = arith.constant 0 : i32
    %c0_i32_0 = arith.constant 0 : i32
    %c0_i32_1 = arith.constant 0 : i32
    return %c0_i32, %c0_i32_0 : i32, i32
  }
  func.func @transform_2(%arg0: i32) -> (i32, i32) {
    %c0_i32 = arith.constant 0 : i32
    %c0_i32_0 = arith.constant 0 : i32
    %c0_i32_1 = arith.constant 0 : i32
    return %c0_i32, %c0_i32_0 : i32, i32
  }
  func.func @transform_3(%arg0: i32) -> (i32, i32) {
    %c0_i32 = arith.constant 0 : i32
    %c0_i32_0 = arith.constant 0 : i32
    return %arg0, %c0_i32 : i32, i32
  }
}

module attributes {stable_mosaic.version = 11 : i64} {
  func.func @_direct3x3_kernel(%arg0: i32, %arg1: memref<1x8x8x128xbf16, #tpu.memory_space<vmem>>, %arg2: memref<9x128x128xbf16, #tpu.memory_space<vmem>>, %arg3: memref<1x128xf32, #tpu.memory_space<vmem>>, %arg4: memref<1x64x128xf32, #tpu.memory_space<vmem>>, %arg5: memref<1x64x128xf32, #tpu.memory_space<vmem>>, %arg6: memref<10x10x128xf32, #tpu.memory_space<vmem>>) attributes {dimension_semantics = [#tpu.dimension_semantics<parallel>], iteration_bounds = array<i64: 2>, scalar_prefetch = 0 : i64, scratch_operands = 1 : i64, tpu.core_type = #tpu.core_type<tc>, window_params = [{transform_indices = @transform_0, window_bounds = array<i64: 1, 8, 8, 128>}, {pipeline_mode = #tpu.pipeline_mode<synchronous>, transform_indices = @transform_1, window_bounds = array<i64: 9, 128, 128>}, {pipeline_mode = #tpu.pipeline_mode<synchronous>, transform_indices = @transform_2, window_bounds = array<i64: 1, 128>}, {transform_indices = @transform_3, window_bounds = array<i64: 1, 64, 128>}, {transform_indices = @transform_4, window_bounds = array<i64: 1, 64, 128>}]} {
    %cst = arith.constant 0.000000e+00 : f32
    %0 = vector.broadcast %cst : f32 to vector<10x10x128xf32>
    %c0 = arith.constant 0 : index
    %c0_0 = arith.constant 0 : index
    %c0_1 = arith.constant 0 : index
    %1 = vector.load %arg6[%c0, %c0_0, %c0_1] : memref<10x10x128xf32, #tpu.memory_space<vmem>>, vector<10x10x128xf32>
    tpu.vector_store %arg6[%c0, %c0_0, %c0_1], %0 {strides = array<i32>} : memref<10x10x128xf32, #tpu.memory_space<vmem>>, vector<10x10x128xf32>,
    %c0_2 = arith.constant 0 : index
    %c0_3 = arith.constant 0 : index
    %c0_4 = arith.constant 0 : index
    %c0_5 = arith.constant 0 : index
    %2 = vector.load %arg1[%c0_2, %c0_3, %c0_4, %c0_5] : memref<1x8x8x128xbf16, #tpu.memory_space<vmem>>, vector<1x8x8x128xbf16>
    %3 = vector.shape_cast %2 : vector<1x8x8x128xbf16> to vector<8x8x128xbf16>
    %4 = arith.extf %3 : vector<8x8x128xbf16> to vector<8x8x128xf32>
    %c1 = arith.constant 1 : index
    %c1_6 = arith.constant 1 : index
    %c0_7 = arith.constant 0 : index
    %5 = vector.load %arg6[%c1, %c1_6, %c0_7] : memref<10x10x128xf32, #tpu.memory_space<vmem>>, vector<8x8x128xf32>
    tpu.vector_store %arg6[%c1, %c1_6, %c0_7], %4 {strides = array<i32>} : memref<10x10x128xf32, #tpu.memory_space<vmem>>, vector<8x8x128xf32>,
    %c0_8 = arith.constant 0 : index
    %c0_9 = arith.constant 0 : index
    %c0_10 = arith.constant 0 : index
    %6 = vector.load %arg6[%c0_8, %c0_9, %c0_10] : memref<10x10x128xf32, #tpu.memory_space<vmem>>, vector<10x10x128xf32>
    %7 = vector.extract_strided_slice %6 {offsets = [0, 0, 0], sizes = [8, 8, 128], strides = [1, 1, 1]} : vector<10x10x128xf32> to vector<8x8x128xf32>
    %8 = vector.shape_cast %7 : vector<8x8x128xf32> to vector<64x128xf32>
    %9 = arith.truncf %8 : vector<64x128xf32> to vector<64x128xbf16>
    %c0_11 = arith.constant 0 : index
    %c0_12 = arith.constant 0 : index
    %c0_13 = arith.constant 0 : index
    %10 = vector.load %arg2[%c0_11, %c0_12, %c0_13] : memref<9x128x128xbf16, #tpu.memory_space<vmem>>, vector<1x128x128xbf16>
    %11 = vector.shape_cast %10 : vector<1x128x128xbf16> to vector<128x128xbf16>
    %cst_14 = arith.constant dense<0.000000e+00> : vector<64x128xf32>
    %12 = tpu.matmul %9, %11, %cst_14 {dimension_numbers = #tpu.dot_dimension_numbers<[1], [0], [0], [1], [0, 0, 1, 1], [], []>} : vector<64x128xbf16>, vector<128x128xbf16>, vector<64x128xf32> -> vector<64x128xf32>
    %13 = vector.extract_strided_slice %6 {offsets = [0, 1, 0], sizes = [8, 8, 128], strides = [1, 1, 1]} : vector<10x10x128xf32> to vector<8x8x128xf32>
    %14 = vector.shape_cast %13 : vector<8x8x128xf32> to vector<64x128xf32>
    %15 = arith.truncf %14 : vector<64x128xf32> to vector<64x128xbf16>
    %c1_15 = arith.constant 1 : index
    %c0_16 = arith.constant 0 : index
    %c0_17 = arith.constant 0 : index
    %16 = vector.load %arg2[%c1_15, %c0_16, %c0_17] : memref<9x128x128xbf16, #tpu.memory_space<vmem>>, vector<1x128x128xbf16>
    %17 = vector.shape_cast %16 : vector<1x128x128xbf16> to vector<128x128xbf16>
    %cst_18 = arith.constant dense<0.000000e+00> : vector<64x128xf32>
    %18 = tpu.matmul %15, %17, %cst_18 {dimension_numbers = #tpu.dot_dimension_numbers<[1], [0], [0], [1], [0, 0, 1, 1], [], []>} : vector<64x128xbf16>, vector<128x128xbf16>, vector<64x128xf32> -> vector<64x128xf32>
    %19 = arith.addf %12, %18 : vector<64x128xf32>
    %20 = vector.extract_strided_slice %6 {offsets = [0, 2, 0], sizes = [8, 8, 128], strides = [1, 1, 1]} : vector<10x10x128xf32> to vector<8x8x128xf32>
    %21 = vector.shape_cast %20 : vector<8x8x128xf32> to vector<64x128xf32>
    %22 = arith.truncf %21 : vector<64x128xf32> to vector<64x128xbf16>
    %c2 = arith.constant 2 : index
    %c0_19 = arith.constant 0 : index
    %c0_20 = arith.constant 0 : index
    %23 = vector.load %arg2[%c2, %c0_19, %c0_20] : memref<9x128x128xbf16, #tpu.memory_space<vmem>>, vector<1x128x128xbf16>
    %24 = vector.shape_cast %23 : vector<1x128x128xbf16> to vector<128x128xbf16>
    %cst_21 = arith.constant dense<0.000000e+00> : vector<64x128xf32>
    %25 = tpu.matmul %22, %24, %cst_21 {dimension_numbers = #tpu.dot_dimension_numbers<[1], [0], [0], [1], [0, 0, 1, 1], [], []>} : vector<64x128xbf16>, vector<128x128xbf16>, vector<64x128xf32> -> vector<64x128xf32>
    %26 = arith.addf %19, %25 : vector<64x128xf32>
    %27 = vector.extract_strided_slice %6 {offsets = [1, 0, 0], sizes = [8, 8, 128], strides = [1, 1, 1]} : vector<10x10x128xf32> to vector<8x8x128xf32>
    %28 = vector.shape_cast %27 : vector<8x8x128xf32> to vector<64x128xf32>
    %29 = arith.truncf %28 : vector<64x128xf32> to vector<64x128xbf16>
    %c3 = arith.constant 3 : index
    %c0_22 = arith.constant 0 : index
    %c0_23 = arith.constant 0 : index
    %30 = vector.load %arg2[%c3, %c0_22, %c0_23] : memref<9x128x128xbf16, #tpu.memory_space<vmem>>, vector<1x128x128xbf16>
    %31 = vector.shape_cast %30 : vector<1x128x128xbf16> to vector<128x128xbf16>
    %cst_24 = arith.constant dense<0.000000e+00> : vector<64x128xf32>
    %32 = tpu.matmul %29, %31, %cst_24 {dimension_numbers = #tpu.dot_dimension_numbers<[1], [0], [0], [1], [0, 0, 1, 1], [], []>} : vector<64x128xbf16>, vector<128x128xbf16>, vector<64x128xf32> -> vector<64x128xf32>
    %33 = arith.addf %26, %32 : vector<64x128xf32>
    %34 = vector.extract_strided_slice %6 {offsets = [1, 1, 0], sizes = [8, 8, 128], strides = [1, 1, 1]} : vector<10x10x128xf32> to vector<8x8x128xf32>
    %35 = vector.shape_cast %34 : vector<8x8x128xf32> to vector<64x128xf32>
    %36 = arith.truncf %35 : vector<64x128xf32> to vector<64x128xbf16>
    %c4 = arith.constant 4 : index
    %c0_25 = arith.constant 0 : index
    %c0_26 = arith.constant 0 : index
    %37 = vector.load %arg2[%c4, %c0_25, %c0_26] : memref<9x128x128xbf16, #tpu.memory_space<vmem>>, vector<1x128x128xbf16>
    %38 = vector.shape_cast %37 : vector<1x128x128xbf16> to vector<128x128xbf16>
    %cst_27 = arith.constant dense<0.000000e+00> : vector<64x128xf32>
    %39 = tpu.matmul %36, %38, %cst_27 {dimension_numbers = #tpu.dot_dimension_numbers<[1], [0], [0], [1], [0, 0, 1, 1], [], []>} : vector<64x128xbf16>, vector<128x128xbf16>, vector<64x128xf32> -> vector<64x128xf32>
    %40 = arith.addf %33, %39 : vector<64x128xf32>
    %41 = vector.extract_strided_slice %6 {offsets = [1, 2, 0], sizes = [8, 8, 128], strides = [1, 1, 1]} : vector<10x10x128xf32> to vector<8x8x128xf32>
    %42 = vector.shape_cast %41 : vector<8x8x128xf32> to vector<64x128xf32>
    %43 = arith.truncf %42 : vector<64x128xf32> to vector<64x128xbf16>
    %c5 = arith.constant 5 : index
    %c0_28 = arith.constant 0 : index
    %c0_29 = arith.constant 0 : index
    %44 = vector.load %arg2[%c5, %c0_28, %c0_29] : memref<9x128x128xbf16, #tpu.memory_space<vmem>>, vector<1x128x128xbf16>
    %45 = vector.shape_cast %44 : vector<1x128x128xbf16> to vector<128x128xbf16>
    %cst_30 = arith.constant dense<0.000000e+00> : vector<64x128xf32>
    %46 = tpu.matmul %43, %45, %cst_30 {dimension_numbers = #tpu.dot_dimension_numbers<[1], [0], [0], [1], [0, 0, 1, 1], [], []>} : vector<64x128xbf16>, vector<128x128xbf16>, vector<64x128xf32> -> vector<64x128xf32>
    %47 = arith.addf %40, %46 : vector<64x128xf32>
    %48 = vector.extract_strided_slice %6 {offsets = [2, 0, 0], sizes = [8, 8, 128], strides = [1, 1, 1]} : vector<10x10x128xf32> to vector<8x8x128xf32>
    %49 = vector.shape_cast %48 : vector<8x8x128xf32> to vector<64x128xf32>
    %50 = arith.truncf %49 : vector<64x128xf32> to vector<64x128xbf16>
    %c6 = arith.constant 6 : index
    %c0_31 = arith.constant 0 : index
    %c0_32 = arith.constant 0 : index
    %51 = vector.load %arg2[%c6, %c0_31, %c0_32] : memref<9x128x128xbf16, #tpu.memory_space<vmem>>, vector<1x128x128xbf16>
    %52 = vector.shape_cast %51 : vector<1x128x128xbf16> to vector<128x128xbf16>
    %cst_33 = arith.constant dense<0.000000e+00> : vector<64x128xf32>
    %53 = tpu.matmul %50, %52, %cst_33 {dimension_numbers = #tpu.dot_dimension_numbers<[1], [0], [0], [1], [0, 0, 1, 1], [], []>} : vector<64x128xbf16>, vector<128x128xbf16>, vector<64x128xf32> -> vector<64x128xf32>
    %54 = arith.addf %47, %53 : vector<64x128xf32>
    %55 = vector.extract_strided_slice %6 {offsets = [2, 1, 0], sizes = [8, 8, 128], strides = [1, 1, 1]} : vector<10x10x128xf32> to vector<8x8x128xf32>
    %56 = vector.shape_cast %55 : vector<8x8x128xf32> to vector<64x128xf32>
    %57 = arith.truncf %56 : vector<64x128xf32> to vector<64x128xbf16>
    %c7 = arith.constant 7 : index
    %c0_34 = arith.constant 0 : index
    %c0_35 = arith.constant 0 : index
    %58 = vector.load %arg2[%c7, %c0_34, %c0_35] : memref<9x128x128xbf16, #tpu.memory_space<vmem>>, vector<1x128x128xbf16>
    %59 = vector.shape_cast %58 : vector<1x128x128xbf16> to vector<128x128xbf16>
    %cst_36 = arith.constant dense<0.000000e+00> : vector<64x128xf32>
    %60 = tpu.matmul %57, %59, %cst_36 {dimension_numbers = #tpu.dot_dimension_numbers<[1], [0], [0], [1], [0, 0, 1, 1], [], []>} : vector<64x128xbf16>, vector<128x128xbf16>, vector<64x128xf32> -> vector<64x128xf32>
    %61 = arith.addf %54, %60 : vector<64x128xf32>
    %62 = vector.extract_strided_slice %6 {offsets = [2, 2, 0], sizes = [8, 8, 128], strides = [1, 1, 1]} : vector<10x10x128xf32> to vector<8x8x128xf32>
    %63 = vector.shape_cast %62 : vector<8x8x128xf32> to vector<64x128xf32>
    %64 = arith.truncf %63 : vector<64x128xf32> to vector<64x128xbf16>
    %c8 = arith.constant 8 : index
    %c0_37 = arith.constant 0 : index
    %c0_38 = arith.constant 0 : index
    %65 = vector.load %arg2[%c8, %c0_37, %c0_38] : memref<9x128x128xbf16, #tpu.memory_space<vmem>>, vector<1x128x128xbf16>
    %66 = vector.shape_cast %65 : vector<1x128x128xbf16> to vector<128x128xbf16>
    %cst_39 = arith.constant dense<0.000000e+00> : vector<64x128xf32>
    %67 = tpu.matmul %64, %66, %cst_39 {dimension_numbers = #tpu.dot_dimension_numbers<[1], [0], [0], [1], [0, 0, 1, 1], [], []>} : vector<64x128xbf16>, vector<128x128xbf16>, vector<64x128xf32> -> vector<64x128xf32>
    %68 = arith.addf %61, %67 : vector<64x128xf32>
    %c0_40 = arith.constant 0 : index
    %c0_41 = arith.constant 0 : index
    %69 = vector.load %arg3[%c0_40, %c0_41] : memref<1x128xf32, #tpu.memory_space<vmem>>, vector<1x128xf32>
    %70 = vector.broadcast %69 : vector<1x128xf32> to vector<64x128xf32>
    %71 = arith.addf %68, %70 : vector<64x128xf32>
    %c0_42 = arith.constant 0 : index
    %c0_43 = arith.constant 0 : index
    %c0_44 = arith.constant 0 : index
    %72 = vector.load %arg4[%c0_42, %c0_43, %c0_44] : memref<1x64x128xf32, #tpu.memory_space<vmem>>, vector<1x64x128xf32>
    %73 = vector.shape_cast %72 : vector<1x64x128xf32> to vector<64x128xf32>
    %74 = arith.addf %71, %73 : vector<64x128xf32>
    %cst_45 = arith.constant 0.000000e+00 : f32
    %75 = vector.broadcast %cst_45 : f32 to vector<64x128xf32>
    %76 = arith.maximumf %74, %75 : vector<64x128xf32>
    %c0_46 = arith.constant 0 : index
    %c0_47 = arith.constant 0 : index
    %c0_48 = arith.constant 0 : index
    %77 = vector.load %arg5[%c0_46, %c0_47, %c0_48] : memref<1x64x128xf32, #tpu.memory_space<vmem>>, vector<1x64x128xf32>
    %78 = vector.shape_cast %77 : vector<1x64x128xf32> to vector<64x128xf32>
    %79 = vector.shape_cast %76 : vector<64x128xf32> to vector<1x64x128xf32>
    tpu.vector_store %arg5[%c0_46, %c0_47, %c0_48], %79 {strides = array<i32>} : memref<1x64x128xf32, #tpu.memory_space<vmem>>, vector<1x64x128xf32>,
    return
  }
  func.func @transform_0(%arg0: i32) -> (i32, i32, i32, i32) {
    %c0_i32 = arith.constant 0 : i32
    %c0_i32_0 = arith.constant 0 : i32
    %c0_i32_1 = arith.constant 0 : i32
    %c0_i32_2 = arith.constant 0 : i32
    return %arg0, %c0_i32, %c0_i32_0, %c0_i32_1 : i32, i32, i32, i32
  }
  func.func @transform_1(%arg0: i32) -> (i32, i32, i32) {
    %c0_i32 = arith.constant 0 : i32
    %c0_i32_0 = arith.constant 0 : i32
    %c0_i32_1 = arith.constant 0 : i32
    %c0_i32_2 = arith.constant 0 : i32
    return %c0_i32, %c0_i32_0, %c0_i32_1 : i32, i32, i32
  }
  func.func @transform_2(%arg0: i32) -> (i32, i32) {
    %c0_i32 = arith.constant 0 : i32
    %c0_i32_0 = arith.constant 0 : i32
    %c0_i32_1 = arith.constant 0 : i32
    return %c0_i32, %c0_i32_0 : i32, i32
  }
  func.func @transform_3(%arg0: i32) -> (i32, i32, i32) {
    %c0_i32 = arith.constant 0 : i32
    %c0_i32_0 = arith.constant 0 : i32
    %c0_i32_1 = arith.constant 0 : i32
    return %arg0, %c0_i32, %c0_i32_0 : i32, i32, i32
  }
  func.func @transform_4(%arg0: i32) -> (i32, i32, i32) {
    %c0_i32 = arith.constant 0 : i32
    %c0_i32_0 = arith.constant 0 : i32
    %c0_i32_1 = arith.constant 0 : i32
    return %arg0, %c0_i32, %c0_i32_0 : i32, i32, i32
  }
}

</mosaic_0001>

<bundles_post_ra>
// kernel: basic_block_forward.2
= control target key start
LH: loop header
LB: loop body
LE: loop exit
PB: predicated region body
PF: predicated region fallthrough
CT: control target
= control target key end

     0   :  { %vm120_vm0 = vcmask 1041408   ;;  %vm95_vm1 = vcmask 293888   ;;  %s428_s1 = inlined_call_operand.vmem [shape: bf16[36,128], index: 1, kind: input, shape index: {}]   ;;  %s429_s2 = inlined_call_operand.vmem [shape: f32[1,128], index: 2, kind: input, shape index: {}]   ;;  %s430_s0 = inlined_call_operand.vmem [shape: bf16[128,36], index: 0, kind: input, shape index: {}]   ;;  %s431_s3 = inlined_call_operand.vmem [shape: bf16[128,128], index: 3, kind: output, shape index: {}]  }
   0x1   :  { %v35_v0 = vld [vmem:[%s428_s1 + $0x10] sm:$0x3]  ;;  %v282_v4 = vld [vmem:[%s428_s1 + $0x8] sm:$0xff]  ;;  %v281_v5 = vld [vmem:[%s428_s1] sm:$0xff] }
   0x2   :  { %v89_v1 = vunpack.c.l.b16 %v35_v0  ;;  %v273_v6 = vld [vmem:[%s430_s0] sm:$0xff]  ;;  %v275_v7 = vld [vmem:[%s430_s0 + $0x10] sm:$0xff]  ;;  %v274_v10 = vld [vmem:[%s430_s0 + $0x8] sm:$0xff] }
   0x3   :  { %v277_v8 = vld [vmem:[%s430_s0 + $0x20] sm:$0xff]  ;;  %v279_v9 = vld [vmem:[%s430_s0 + $0x30] sm:$0xff]  ;;  %v276_v11 = vld [vmem:[%s430_s0 + $0x18] sm:$0xff] }
   0x4   :  { %v92_v2 = vpack.c.b16 %v89_v1, %v89_v1  ;;  %v278_v12 = vld [vmem:[%s430_s0 + $0x28] sm:$0xff]  ;;  %v280_v13 = vld [vmem:[%s430_s0 + $0x38] sm:$0xff]  ;;  %v339_v16 = vld [vmem:[%s429_s2] ss:$0 sm:$0xff] }
   0x6   :  { %v122_v3 = vsel %vm120_vm0, %v92_v2, 0 }
   0x7   :  { %129 = vmatpush.bf16.msra.mxu0 %v122_v3  ;;  %330 = vmatpush.bf16.msra.mxu1 %v122_v3 }
   0x8   :  { %331 = vmatpush.bf16.msra.mxu2 %v122_v3  ;;  %332 = vmatpush.bf16.msra.mxu3 %v122_v3 }
   0xb   :  { %130 = vmatpush.bf16.msra.mxu0 %v282_v4  ;;  %333 = vmatpush.bf16.msra.mxu1 %v282_v4 }
   0xc   :  { %334 = vmatpush.bf16.msra.mxu2 %v282_v4  ;;  %335 = vmatpush.bf16.msra.mxu3 %v282_v4 }
   0xf   :  { %131 = vmatpush.bf16.msra.mxu0 %v281_v5  ;;  %336 = vmatpush.bf16.msra.mxu1 %v281_v5 }
  0x10   :  { %337 = vmatpush.bf16.msra.mxu2 %v281_v5  ;;  %338 = vmatpush.bf16.msra.mxu3 %v281_v5 }
  0x12   :  { %265 = vmatmul.msk.bf16.vlgmr.msra.gmra.mxu0 %vm95_vm1, %v273_v6  ;;  %267 = vmatmul.msk.bf16.vlgmr.msra.gmra.mxu1 %vm95_vm1, %v275_v7 }
  0x13   :  { %269 = vmatmul.msk.bf16.vlgmr.msra.gmra.mxu2 %vm95_vm1, %v277_v8  ;;  %271 = vmatmul.msk.bf16.vlgmr.msra.gmra.mxu3 %vm95_vm1, %v279_v9 }
  0x22   :  { %266 = vmatmul.msk.bf16.gmra.mxu0 %vm95_vm1, %v274_v10  ;;  %268 = vmatmul.msk.bf16.gmra.mxu1 %vm95_vm1, %v276_v11 }
  0x23   :  { %270 = vmatmul.msk.bf16.gmra.mxu2 %vm95_vm1, %v278_v12  ;;  %272 = vmatmul.msk.bf16.gmra.mxu3 %vm95_vm1, %v280_v13 }
  0x8f   :  { %v133_v14 = vpop.f32.mrf.mxu0  ;;  %v143_v15 = vpop.f32.mrf.mxu1 }
  0x90   :  { %v134_v17 = vadd.f32 %v339_v16, %v133_v14  ;;  %v144_v18 = vadd.f32 %v339_v16, %v143_v15 }
  0x92   :  { %v173_v25 = vmax.f32 %v134_v17, 0.0  ;;  %v177_v26 = vmax.f32 %v144_v18, 0.0 }
  0x96   :  { %v153_v19 = vpop.f32.mrf.mxu2  ;;  %v163_v20 = vpop.f32.mrf.mxu3 }
  0x97   :  { %v135_v21 = vpop.f32.mrf.mxu0  ;;  %v145_v22 = vpop.f32.mrf.mxu1  ;;  %v154_v31 = vadd.f32 %v339_v16, %v153_v19  ;;  %v164_v32 = vadd.f32 %v339_v16, %v163_v20 }
  0x98   :  { %v136_v23 = vadd.f32 %v339_v16, %v135_v21  ;;  %v146_v24 = vadd.f32 %v339_v16, %v145_v22 }
  0x99   :  { %v181_v39 = vmax.f32 %v154_v31, 0.0  ;;  %v185_v40 = vmax.f32 %v164_v32, 0.0 }
  0x9a   :  { %v174_v27 = vmax.f32 %v136_v23, 0.0  ;;  %v178_v28 = vmax.f32 %v146_v24, 0.0 }
  0x9c   :  { %v286_v29 = vpack.c.bf16 %v174_v27, %v173_v25  ;;  %v296_v30 = vpack.c.bf16 %v178_v28, %v177_v26 }
  0x9e   :  { %287 = vst [vmem:[%s431_s3] sm:$0xff] %v286_v29   ;;  %v155_v33 = vpop.f32.mrf.mxu2  ;;  %v165_v34 = vpop.f32.mrf.mxu3 }
  0x9f   :  { %324 = vst [vmem:[%s431_s3 + $0x10] sm:$0xff] %v296_v30   ;;  %v156_v35 = vadd.f32 %v339_v16, %v155_v33  ;;  %v166_v36 = vadd.f32 %v339_v16, %v165_v34  ;;  %v138_v37 = vpop.f32.mrf.mxu0  ;;  %v148_v38 = vpop.f32.mrf.mxu1 }
  0xa0   :  { %v139_v45 = vadd.f32 %v339_v16, %v138_v37  ;;  %v149_v46 = vadd.f32 %v339_v16, %v148_v38 }
  0xa1   :  { %v182_v41 = vmax.f32 %v156_v35, 0.0  ;;  %v186_v42 = vmax.f32 %v166_v36, 0.0 }
  0xa2   :  { %v175_v53 = vmax.f32 %v139_v45, 0.0  ;;  %v179_v54 = vmax.f32 %v149_v46, 0.0 }
  0xa3   :  { %v306_v43 = vpack.c.bf16 %v182_v41, %v181_v39  ;;  %v316_v44 = vpack.c.bf16 %v186_v42, %v185_v40 }
  0xa5   :  { %326 = vst [vmem:[%s431_s3 + $0x20] sm:$0xff] %v306_v43  }
  0xa6   :  { %328 = vst [vmem:[%s431_s3 + $0x30] sm:$0xff] %v316_v44   ;;  %v158_v47 = vpop.f32.mrf.mxu2  ;;  %v168_v48 = vpop.f32.mrf.mxu3 }
  0xa7   :  { %v140_v49 = vpop.f32.mrf.mxu0  ;;  %v150_v50 = vpop.f32.mrf.mxu1  ;;  %v159_v59 = vadd.f32 %v339_v16, %v158_v47  ;;  %v169_v60 = vadd.f32 %v339_v16, %v168_v48 }
  0xa8   :  { %v141_v51 = vadd.f32 %v339_v16, %v140_v49  ;;  %v151_v52 = vadd.f32 %v339_v16, %v150_v50 }
  0xa9   :  { %v183_v1 = vmax.f32 %v159_v59, 0.0  ;;  %v187_v2 = vmax.f32 %v169_v60, 0.0 }
  0xaa   :  { %v176_v55 = vmax.f32 %v141_v51, 0.0  ;;  %v180_v56 = vmax.f32 %v151_v52, 0.0 }
  0xac   :  { %v291_v57 = vpack.c.bf16 %v176_v55, %v175_v53  ;;  %v301_v58 = vpack.c.bf16 %v180_v56, %v179_v54 }
  0xae   :  { %323 = vst [vmem:[%s431_s3 + $0x8] sm:$0xff] %v291_v57   ;;  %v160_v61 = vpop.f32.mrf.mxu2  ;;  %v170_v62 = vpop.f32.mrf.mxu3 }
  0xaf   :  { %325 = vst [vmem:[%s431_s3 + $0x18] sm:$0xff] %v301_v58   ;;  %v161_v63 = vadd.f32 %v339_v16, %v160_v61  ;;  %v171_v0 = vadd.f32 %v339_v16, %v170_v62 }
  0xb1   :  { %v184_v3 = vmax.f32 %v161_v63, 0.0  ;;  %v188_v4 = vmax.f32 %v171_v0, 0.0 }
  0xb3   :  { %v311_v5 = vpack.c.bf16 %v184_v3, %v183_v1  ;;  %v321_v6 = vpack.c.bf16 %v188_v4, %v187_v2 }
  0xb5   :  { %327 = vst [vmem:[%s431_s3 + $0x28] sm:$0xff] %v311_v5  }
  0xb6   :  { %329 = vst [vmem:[%s431_s3 + $0x38] sm:$0xff] %v321_v6  }

// kernel: basic_block_forward.3
= control target key start
LH: loop header
LB: loop body
LE: loop exit
PB: predicated region body
PF: predicated region fallthrough
CT: control target
= control target key end

     0   :  { %s2007_s15 = smov 0   ;;  %s2543_s0 = inlined_call_operand.vmem [shape: bf16[2,8,8,128], index: 0, kind: input, shape index: {}]   ;;  %s2544_s1 = inlined_call_operand.vmem [shape: bf16[9,128,128], index: 1, kind: input, shape index: {}]   ;;  %s2545_s2 = inlined_call_operand.vmem [shape: f32[1,128], index: 2, kind: input, shape index: {}]   ;;  %s2546_s3 = inlined_call_operand.vmem [shape: f32[2,64,128], index: 3, kind: input, shape index: {}]   ;;  %s2547_s4 = inlined_call_operand.vmem [shape: f32[2,64,128], index: 4, kind: output, shape index: {}]  }
   0x1 LB: > { %s1424_s16 = sadd.s32 4294967295, %s1979_s15   ;;  %p1428_p0 = scmp.ge.s32.totalorder %s1979_s15, 1  ;;  %s1979_s15 = sphi %s2007_s15, %s14_s15  }
   0x2   : > { %p172_p1 = scmp.lt.s32.totalorder %s1979_s15, 3 }
   0x4   : > { %p173_p2 = pnand %p1428_p0, %p172_p1 }
   0x5   : > { %p203_p3 = scmp.lt.s32.totalorder (!%p173_p2), %s1424_s16, 1 }
   0x6   : > { %176 = sbr.rel (%p173_p2) target bundleno = 336 (0x150), region = 36 }
   0xb   : > { %v1871_v0 = vld [vmem:[%s2544_s1 + $0x78] sm:$0xff]  ;;  %v1981_v2 = vmov 0.0   ;;  %v1870_v3 = vld [vmem:[%s2544_s1 + $0x70] sm:$0xff]  ;;  %s2549_s16 = smov (!%p203_p3, %s1424_s16), 1  ;;  %v1869_v7 = vld [vmem:[%s2544_s1 + $0x68] sm:$0xff]  ;;  %vm319_vm0 = vcmask 1046528  }
   0xc   : > { %v1879_v1 = vld [vmem:[%s2544_s1 + $0xb8] sm:$0xff]  ;;  %226 = vst [vmem:[#allocation2 + $0x40] sm:$0xff] %v1981_v2  ;;  %1947 = vmatpush.bf16.msra.mxu1 %v1871_v0  ;;  %421 = vmatpush.bf16.msra.mxu0 %v1871_v0  ;;  %v1878_v4 = vld [vmem:[%s2544_s1 + $0xb0] sm:$0xff]  ;;  %s1853_s27 = sshll.u32 %s2549_s16, 5  ;;  %v1877_v10 = vld [vmem:[%s2544_s1 + $0xa8] sm:$0xff]  ;;  %v2129_v41 = vrot.slane %v1981_v2, 1 }
   0xd   : > { %227 = vst [vmem:[#allocation2 + $0x48] sm:$0x3] %v1981_v2  ;;  %629 = vmatpush.bf16.msra.mxu2 %v1879_v1  ;;  %v1887_v5 = vld [vmem:[%s2544_s1 + $0xf8] sm:$0xff]  ;;  %v1886_v6 = vld [vmem:[%s2544_s1 + $0xf0] sm:$0xff]  ;;  %s2043_s6 = scalar_lea.vmem %s2543_s0, %s1853_s27  ;;  %v1885_v13 = vld [vmem:[%s2544_s1 + $0xe8] sm:$0xff]  ;;  %v2132_v42 = vrot.slane %v1981_v2, 2 }
   0xe   : > { %228 = vst [vmem:[#allocation2 + $0x50] sm:$0xff] %v1981_v2  ;;  %735 = vmatpush.bf16.msra.mxu3 %v1887_v5  ;;  %v2049_v8 = vld [vmem:[%s2043_s6 + $0x8] sm:$0xff]   ;;  %v2052_v9 = vld [vmem:[%s2043_s6 + $0x10] sm:$0xff]   ;;  %v1868_v14 = vld [vmem:[%s2544_s1 + $0x60] sm:$0xff]  ;;  %vm527_vm1 = vcmask 1045504   ;;  %s1854_s21 = sshll.u32 %s2549_s16, 6 }
   0xf   : > { %229 = vst [vmem:[#allocation2 + $0x58] sm:$0x3] %v1981_v2  ;;  %v1935_v11 = vunpack.c.h.bf16 %v2049_v8  ;;  %v1938_v12 = vunpack.c.l.bf16 %v2052_v9  ;;  %v1876_v15 = vld [vmem:[%s2544_s1 + $0xa0] sm:$0xff]  ;;  %v1867_v17 = vld [vmem:[%s2544_s1 + $0x58] sm:$0xff]  ;;  %v1866_v20 = vld [vmem:[%s2544_s1 + $0x50] sm:$0xff]  ;;  %v1939_v29 = vunpack.c.h.bf16 %v2052_v9  ;;  %v1934_v40 = vunpack.c.l.bf16 %v2049_v8  ;;  %s2489_s24 = scalar_lea.vmem %s2546_s3, %s1854_s21  ;;  %s2502_s28 = scalar_lea.vmem %s2547_s4, %s1854_s21 }
  0x10   : > { %1948 = vmatpush.bf16.msra.mxu1 %v1870_v3  ;;  %422 = vmatpush.bf16.msra.mxu0 %v1870_v3  ;;  %219 = vst [vmem:[#allocation2 + $0x8] sm:$0x3] %v1981_v2  ;;  %v1884_v16 = vld [vmem:[%s2544_s1 + $0xe0] sm:$0xff]  ;;  %v1875_v18 = vld [vmem:[%s2544_s1 + $0x98] sm:$0xff]  ;;  %v1874_v22 = vld [vmem:[%s2544_s1 + $0x90] sm:$0xff] }
  0x11   : > { %630 = vmatpush.bf16.msra.mxu2 %v1878_v4  ;;  %220 = vst [vmem:[#allocation2 + $0x10] sm:$0xff] %v1981_v2  ;;  %v1929_v19 = vld [vmem:[%s2043_s6] sm:$0xff]   ;;  %v1883_v21 = vld [vmem:[%s2544_s1 + $0xd8] sm:$0xff]  ;;  %v1865_v30 = vld [vmem:[%s2544_s1 + $0x48] sm:$0xff] }
  0x12   : > { %221 = vst [vmem:[#allocation2 + $0x18] sm:$0x3] %v1981_v2  ;;  %736 = vmatpush.bf16.msra.mxu3 %v1886_v6  ;;  %v2101_v24 = vld [vmem:[%s2043_s6 + $0x18] sm:$0xff]   ;;  %v1930_v28 = vunpack.c.l.bf16 %v1929_v19  ;;  %v1882_v31 = vld [vmem:[%s2544_s1 + $0xd0] sm:$0xff]  ;;  %v1931_v33 = vunpack.c.h.bf16 %v1929_v19  ;;  %v1873_v38 = vld [vmem:[%s2544_s1 + $0x88] sm:$0xff] }
  0x13   : > { %258 = vst [vmem:[#allocation2 + $0x41] sm:$0xff] %v1935_v11  ;;  %v1942_v32 = vunpack.c.l.bf16 %v2101_v24  ;;  %v1881_v43 = vld [vmem:[%s2544_s1 + $0xc8] sm:$0xff]  ;;  %v1864_v44 = vld [vmem:[%s2544_s1 + $0x40] sm:$0xff]  ;;  %v1863_v49 = vld [vmem:[%s2544_s1 + $0x38] sm:$0xff] }
  0x14   : > { %1949 = vmatpush.bf16.msra.mxu1 %v1869_v7  ;;  %423 = vmatpush.bf16.msra.mxu0 %v1869_v7  ;;  %259 = vst [vmem:[#allocation2 + $0x51] sm:$0xff] %v1938_v12  ;;  %v1872_v50 = vld [vmem:[%s2544_s1 + $0x80] sm:$0xff]  ;;  %v1895_v51 = vld [vmem:[%s2544_s1 + $0x138] sm:$0xff]  ;;  %v1862_v60 = vld [vmem:[%s2544_s1 + $0x30] sm:$0xff] }
  0x15   : > { %631 = vmatpush.bf16.msra.mxu2 %v1877_v10  ;;  %222 = vst [vmem:[#allocation2 + $0x20] sm:$0xff] %v1981_v2  ;;  %v1911_v52 = vld [vmem:[%s2544_s1 + $0x1b8] sm:$0xff]  ;;  %v1880_v54 = vld [vmem:[%s2544_s1 + $0xc0] sm:$0xff]  ;;  %v1894_v5 = vld [vmem:[%s2544_s1 + $0x130] sm:$0xff] }
  0x16   : > { %223 = vst [vmem:[#allocation2 + $0x28] sm:$0x3] %v1981_v2  ;;  %737 = vmatpush.bf16.msra.mxu3 %v1885_v13  ;;  %v1919_v59 = vld [vmem:[%s2544_s1 + $0x1f8] sm:$0xff]  ;;  %v1910_v7 = vld [vmem:[%s2544_s1 + $0x1b0] sm:$0xff]  ;;  %v1861_v12 = vld [vmem:[%s2544_s1 + $0x28] sm:$0xff] }
  0x17   : > { %224 = vst [vmem:[#allocation2 + $0x30] sm:$0xff] %v1981_v2  ;;  %v264_v39 = vld [vmem:[#allocation2 + $0x8] sm:$0x3] }
  0x18   : > { %1950 = vmatpush.bf16.msra.mxu1 %v1868_v14  ;;  %424 = vmatpush.bf16.msra.mxu0 %v1868_v14  ;;  %225 = vst [vmem:[#allocation2 + $0x38] sm:$0x3] %v1981_v2  ;;  %v321_v47 = vrot.slane %v264_v39, 1  ;;  %v529_v48 = vrot.slane %v264_v39, 2 }
  0x19   : > { %632 = vmatpush.bf16.msra.mxu2 %v1876_v15  ;;  %230 = vst [vmem:[#allocation2 + $0x60] sm:$0xff] %v1981_v2 }
  0x1a   : > { %231 = vst [vmem:[#allocation2 + $0x68] sm:$0x3] %v1981_v2  ;;  %738 = vmatpush.bf16.msra.mxu3 %v1884_v16  ;;  %v2097_v23 = vld [vmem:[#allocation2 + $0x40] sm:$0xff]  ;;  %v2103_v25 = vld [vmem:[#allocation2 + $0x48] sm:$0x3]  ;;  %v322_v57 = vsel %vm319_vm0, %v2129_v41, %v321_v47  ;;  %v530_v58 = vsel %vm527_vm1, %v2132_v42, %v529_v48 }
  0x1b   : > { %232 = vst [vmem:[#allocation2 + $0x70] sm:$0xff] %v1981_v2  ;;  %v2105_v26 = vld [vmem:[#allocation2 + $0x50] sm:$0xff]  ;;  %v2107_v27 = vld [vmem:[#allocation2 + $0x58] sm:$0x3]  ;;  %v332_v34 = vrot.slane %v2097_v23, 1  ;;  %v333_v35 = vrot.slane %v2103_v25, 1 }
  0x1c   : > { %1951 = vmatpush.bf16.msra.mxu1 %v1867_v17  ;;  %425 = vmatpush.bf16.msra.mxu0 %v1867_v17  ;;  %233 = vst [vmem:[#allocation2 + $0x78] sm:$0x3] %v1981_v2  ;;  %v335_v36 = vrot.slane %v2105_v26, 1  ;;  %v336_v37 = vrot.slane %v2107_v27, 1 }
  0x1d   : > { %633 = vmatpush.bf16.msra.mxu2 %v1875_v18  ;;  %234 = vst [vmem:[#allocation2 + $0x80] sm:$0xff] %v1981_v2  ;;  %v2141_v45 = vsel %vm319_vm0, %v332_v34, %v333_v35  ;;  %v1917_v35 = vld [vmem:[%s2544_s1 + $0x1e8] sm:$0xff] }
  0x1e   : > { %235 = vst [vmem:[#allocation2 + $0x88] sm:$0x3] %v1981_v2  ;;  %739 = vmatpush.bf16.msra.mxu3 %v1883_v21  ;;  %v2144_v46 = vsel %vm319_vm0, %v335_v36, %v336_v37  ;;  %v1893_v21 = vld [vmem:[%s2544_s1 + $0x128] sm:$0xff] }
  0x1f   : > { %237 = vst [vmem:[#allocation2 + $0x98] sm:$0x3] %v1981_v2  ;;  %v2160_v53 = vpack.c.bf16 %v2144_v46, %v2141_v45 }
  0x20   : > { %1952 = vmatpush.bf16.msra.mxu1 %v1866_v20  ;;  %426 = vmatpush.bf16.msra.mxu0 %v1866_v20  ;;  %255 = vst [vmem:[#allocation2 + $0x11] sm:$0xff] %v1930_v28  ;;  %v1918_v20 = vld [vmem:[%s2544_s1 + $0x1f0] sm:$0xff] }
  0x21   : > { %634 = vmatpush.bf16.msra.mxu2 %v1874_v22  ;;  %260 = vst [vmem:[#allocation2 + $0x61] sm:$0xff] %v1939_v29 }
  0x22   : > { %740 = vmatpush.bf16.msra.mxu3 %v1882_v31  ;;  %261 = vst [vmem:[#allocation2 + $0x71] sm:$0xff] %v1942_v32 }
  0x23   : > { %256 = vst [vmem:[#allocation2 + $0x21] sm:$0xff] %v1931_v33  ;;  %v1860_v33 = vld [vmem:[%s2544_s1 + $0x20] sm:$0xff] }
  0x24   : > { %1953 = vmatpush.bf16.msra.mxu1 %v1865_v30  ;;  %427 = vmatpush.bf16.msra.mxu0 %v1865_v30  ;;  %257 = vst [vmem:[#allocation2 + $0x31] sm:$0xff] %v1934_v40  ;;  %v1909_v30 = vld [vmem:[%s2544_s1 + $0x1a8] sm:$0xff] }
  0x25   : > { %635 = vmatpush.bf16.msra.mxu2 %v1873_v38 }
  0x26   : > { %741 = vmatpush.bf16.msra.mxu3 %v1881_v43  ;;  %v1892_v43 = vld [vmem:[%s2544_s1 + $0x120] sm:$0xff] }
  0x27   : > { %v2165_v55 = vld [vmem:[#allocation2 + $0x10] sm:$0xff]  ;;  %v266_v56 = vld [vmem:[#allocation2 + $0x18] sm:$0x3] }
  0x28   : > { %1954 = vmatpush.bf16.msra.mxu1 %v1864_v44  ;;  %428 = vmatpush.bf16.msra.mxu0 %v1864_v44  ;;  %v323_v61 = vrot.slane %v2165_v55, 1  ;;  %v324_v62 = vrot.slane %v266_v56, 1  ;;  %v531_v63 = vrot.slane %v2165_v55, 2  ;;  %v532_v0 = vrot.slane %v266_v56, 2  ;;  %v2179_v1 = vld [vmem:[#allocation2 + $0x60] sm:$0xff]  ;;  %v1891_v56 = vld [vmem:[%s2544_s1 + $0x118] sm:$0xff] }
  0x29   : > { %636 = vmatpush.bf16.msra.mxu2 %v1872_v50  ;;  %v2191_v6 = vld [vmem:[#allocation2 + $0x68] sm:$0x3]  ;;  %v2198_v10 = vld [vmem:[#allocation2 + $0x70] sm:$0xff]  ;;  %v2200_v11 = vld [vmem:[#allocation2 + $0x78] sm:$0x3]  ;;  %v338_v13 = vrot.slane %v2179_v1, 1 }
  0x2a   : > { %v2183_v3 = vsel %vm319_vm0, %v323_v61, %v324_v62  ;;  %v2186_v4 = vsel %vm527_vm1, %v531_v63, %v532_v0  ;;  %742 = vmatpush.bf16.msra.mxu3 %v1880_v54  ;;  %v2206_v14 = vld [vmem:[#allocation2 + $0x20] sm:$0xff]  ;;  %v268_v15 = vld [vmem:[#allocation2 + $0x28] sm:$0x3]  ;;  %v339_v16 = vrot.slane %v2191_v6, 1  ;;  %v341_v22 = vrot.slane %v2198_v10, 1  ;;  %v1859_v50 = vld [vmem:[%s2544_s1 + $0x18] sm:$0xff] }
  0x2b   : > { %439 = vmatmul.bf16.vlgmr.msra.gmra.mxu1 %v2160_v53  ;;  %v352_v8 = vpack.c.bf16 %v2183_v3, %v322_v57  ;;  %v560_v9 = vpack.c.bf16 %v2186_v4, %v530_v58  ;;  %v666_v17 = vpack.c.bf16 %v2206_v14, %v2165_v55  ;;  %v534_v18 = vrot.slane %v2206_v14, 2  ;;  %v2220_v29 = vld [vmem:[#allocation2 + $0x30] sm:$0xff]  ;;  %v270_v31 = vld [vmem:[#allocation2 + $0x38] sm:$0x3]  ;;  %v1857_v0 = vld [vmem:[%s2544_s1 + $0x8] sm:$0xff] }
  0x2c   : > { %498 = vmatpush.bf16.msrb.mxu1 %v1863_v49  ;;  %847 = vmatpush.bf16.msrb.mxu0 %v1895_v51  ;;  %v535_v19 = vrot.slane %v268_v15, 2  ;;  %v342_v28 = vrot.slane %v2200_v11, 1  ;;  %v2237_v36 = vsel %vm319_vm0, %v338_v13, %v339_v16  ;;  %v326_v37 = vrot.slane %v2206_v14, 1  ;;  %v1908_v49 = vld [vmem:[%s2544_s1 + $0x1a0] sm:$0xff]  ;;  %v1858_v58 = vld [vmem:[%s2544_s1 + $0x10] sm:$0xff]  ;;  %v1907_v62 = vld [vmem:[%s2544_s1 + $0x198] sm:$0xff] }
  0x2d   : > { %1060 = vmatpush.bf16.msrb.mxu2 %v1911_v52  ;;  %429 = vmatmul.bf16.vlgmr.msra.gmra.mxu0 %v352_v8  ;;  %v327_v38 = vrot.slane %v268_v15, 1  ;;  %v329_v39 = vrot.slane %v2220_v29, 1  ;;  %v330_v44 = vrot.slane %v270_v31, 1  ;;  %v537_v47 = vrot.slane %v2220_v29, 2  ;;  %v1890_v61 = vld [vmem:[%s2544_s1 + $0x110] sm:$0xff]  ;;  %v1915_v13 = vld [vmem:[%s2544_s1 + $0x1d8] sm:$0xff] }
  0x2e   : > { %1169 = vmatpush.bf16.msrb.mxu3 %v1919_v59  ;;  %637 = vmatmul.bf16.vlgmr.msra.gmra.mxu2 %v560_v9  ;;  %v2226_v32 = vsel %vm527_vm1, %v534_v18, %v535_v19  ;;  %v2242_v40 = vsel %vm319_vm0, %v341_v22, %v342_v28  ;;  %v538_v48 = vrot.slane %v270_v31, 2  ;;  %v667_v63 = vpack.c.bf16 %v2097_v23, %v2220_v29  ;;  %v1906_v8 = vld [vmem:[%s2544_s1 + $0x190] sm:$0xff]  ;;  %v1903_v15 = vld [vmem:[%s2544_s1 + $0x178] sm:$0xff]  ;;  %v1888_v16 = vld [vmem:[%s2544_s1 + $0x100] sm:$0xff] }
  0x2f   : > { %743 = vmatmul.bf16.vlgmr.msra.gmra.mxu3 %v666_v17  ;;  %v888_v34 = vpack.c.bf16 %v2226_v32, %v2186_v4  ;;  %v2256_v51 = vpack.c.bf16 %v2242_v40, %v2237_v36  ;;  %v328_v52 = vsel %vm319_vm0, %v326_v37, %v327_v38  ;;  %v2260_v54 = vsel %vm319_vm0, %v329_v39, %v330_v44  ;;  %v1902_v28 = vld [vmem:[%s2544_s1 + $0x170] sm:$0xff]  ;;  %v1925_v37 = vld [vmem:[%s2544_s1 + $0x228] sm:$0xff]  ;;  %v1900_v38 = vld [vmem:[%s2544_s1 + $0x160] sm:$0xff] }
  0x30   : > { %499 = vmatpush.bf16.msrb.mxu1 %v1862_v60  ;;  %848 = vmatpush.bf16.msrb.mxu0 %v1894_v5  ;;  %v2266_v57 = vsel %vm527_vm1, %v537_v47, %v538_v48  ;;  %v2272_v59 = vpack.c.bf16 %v2260_v54, %v328_v52  ;;  %v1916_v5 = vld [vmem:[%s2544_s1 + $0x1e0] sm:$0xff]  ;;  %v2303_v9 = vpack.c.bf16 %v2105_v26, %v2097_v23  ;;  %v540_v17 = vrot.slane %v2097_v23, 2  ;;  %v1913_v39 = vld [vmem:[%s2544_s1 + $0x1c8] sm:$0xff] }
  0x31   : > { %1061 = vmatpush.bf16.msrb.mxu2 %v1910_v7  ;;  %v2276_v60 = vpack.c.bf16 %v2266_v57, %v2226_v32  ;;  %v1889_v7 = vld [vmem:[%s2544_s1 + $0x108] sm:$0xff]  ;;  %v541_v18 = vrot.slane %v2103_v25, 2  ;;  %v543_v19 = vrot.slane %v2105_v26, 2  ;;  %v1943_v22 = vunpack.c.h.bf16 %v2101_v24  ;;  %v1926_v24 = vld [vmem:[%s2544_s1 + $0x230] sm:$0xff] }
  0x32   : > { %1170 = vmatpush.bf16.msrb.mxu3 %v1918_v20  ;;  %v544_v20 = vrot.slane %v2107_v27, 2  ;;  %v283_v23 = vpack.c.bf16 %v2165_v55, %v1981_v2  ;;  %v1905_v2 = vld [vmem:[%s2544_s1 + $0x188] sm:$0xff]  ;;  %v546_v44 = vrot.slane %v2179_v1, 2  ;;  %v547_v47 = vrot.slane %v2191_v6, 2  ;;  %v1898_v6 = vld [vmem:[%s2544_s1 + $0x150] sm:$0xff] }
  0x33   : > { %v2331_v25 = vsel %vm527_vm1, %v540_v17, %v541_v18  ;;  %262 = vst [vmem:[#allocation2 + $0x81] sm:$0xff] %v1943_v22  ;;  %v1901_v55 = vld [vmem:[%s2544_s1 + $0x168] sm:$0xff]  ;;  %v549_v48 = vrot.slane %v2198_v10, 2 }
  0x34   : > { %500 = vmatpush.bf16.msrb.mxu1 %v1861_v12  ;;  %849 = vmatpush.bf16.msrb.mxu0 %v1893_v21  ;;  %v1856_v12 = vld [vmem:[%s2544_s1] sm:$0xff]  ;;  %v1927_v21 = vld [vmem:[%s2544_s1 + $0x238] sm:$0xff]  ;;  %v2334_v27 = vsel %vm527_vm1, %v543_v19, %v544_v20 }
  0x35   : > { %1062 = vmatpush.bf16.msrb.mxu2 %v1909_v30  ;;  %v778_v30 = vpack.c.bf16 %v328_v52, %v2183_v3  ;;  %v2342_v31 = vpack.c.bf16 %v2334_v27, %v2331_v25  ;;  %v1904_v3 = vld [vmem:[%s2544_s1 + $0x180] sm:$0xff]  ;;  %v284_v52 = vpack.c.bf16 %v2220_v29, %v2206_v14 }
  0x36   : > { %1171 = vmatpush.bf16.msrb.mxu3 %v1917_v35  ;;  %v1914_v35 = vld [vmem:[%s2544_s1 + $0x1d0] sm:$0xff]  ;;  %v1912_v14 = vld [vmem:[%s2544_s1 + $0x1c0] sm:$0xff] }
  0x38   : > { %501 = vmatpush.bf16.msrb.mxu1 %v1860_v33  ;;  %850 = vmatpush.bf16.msrb.mxu0 %v1892_v43  ;;  %v668_v33 = vpack.c.bf16 %v2179_v1, %v2105_v26  ;;  %v2364_v26 = vpack.c.bf16 %v2198_v10, %v2179_v1  ;;  %v1924_v43 = vld [vmem:[%s2544_s1 + $0x220] sm:$0xff] }
  0x39   : > { %1063 = vmatpush.bf16.msrb.mxu2 %v1908_v49  ;;  %v550_v49 = vrot.slane %v2200_v11, 2 }
  0x3a   : > { %1172 = vmatpush.bf16.msrb.mxu3 %v1916_v5  ;;  %v2393_v11 = vld [vmem:[#allocation2 + $0x80] sm:$0xff] }
  0x3b   : > { %444 = vmatmul.bf16.gmra.mxu1 %v2256_v51  ;;  %v2388_v1 = vsel %vm527_vm1, %v549_v48, %v550_v49  ;;  %v669_v29 = vpack.c.bf16 %v2393_v11, %v2198_v10  ;;  %v1896_v10 = vld [vmem:[%s2544_s1 + $0x140] sm:$0xff] }
  0x3c   : > { %502 = vmatpush.bf16.msrb.mxu1 %v1859_v50  ;;  %851 = vmatpush.bf16.msrb.mxu0 %v1891_v56  ;;  %v1899_v50 = vld [vmem:[%s2544_s1 + $0x158] sm:$0xff]  ;;  %v2385_v56 = vsel %vm527_vm1, %v546_v44, %v547_v47  ;;  %v1920_v5 = vld [vmem:[%s2544_s1 + $0x200] sm:$0xff] }
  0x3d   : > { %1064 = vmatpush.bf16.msrb.mxu2 %v1907_v62  ;;  %434 = vmatmul.bf16.gmra.mxu0 %v2272_v59  ;;  %v1897_v62 = vld [vmem:[%s2544_s1 + $0x148] sm:$0xff] }
  0x3e   : > { %642 = vmatmul.bf16.gmra.mxu2 %v2276_v60  ;;  %1173 = vmatpush.bf16.msrb.mxu3 %v1915_v13 }
  0x3f   : > { %748 = vmatmul.bf16.gmra.mxu3 %v667_v63  ;;  %v1921_v63 = vld [vmem:[%s2544_s1 + $0x208] sm:$0xff] }
  0x40   : > { %503 = vmatpush.bf16.msrb.mxu1 %v1858_v58  ;;  %852 = vmatpush.bf16.msrb.mxu0 %v1890_v61  ;;  %v779_v58 = vpack.c.bf16 %v2141_v45, %v2260_v54  ;;  %v2399_v61 = vpack.c.bf16 %v2388_v1, %v2385_v56  ;;  %v1923_v45 = vld [vmem:[%s2544_s1 + $0x218] sm:$0xff]  ;;  %v1922_v54 = vld [vmem:[%s2544_s1 + $0x210] sm:$0xff] }
  0x41   : > { %1065 = vmatpush.bf16.msrb.mxu2 %v1906_v8  ;;  %v280_v8 = vld [vmem:[#allocation2 + $0x88] sm:$0x3] }
  0x42   : > { %1174 = vmatpush.bf16.msrb.mxu3 %v1914_v35  ;;  %v885_v4 = vrot.slane %v280_v8, 2 }
  0x44   : > { %504 = vmatpush.bf16.msrb.mxu1 %v1857_v0  ;;  %853 = vmatpush.bf16.msrb.mxu0 %v1889_v7  ;;  %v780_v0 = vpack.c.bf16 %v2237_v36, %v2144_v46  ;;  %v889_v7 = vpack.c.bf16 %v2331_v25, %v2266_v57  ;;  %v775_v46 = vrot.slane %v280_v8, 1  ;;  %v282_v57 = vld [vmem:[#allocation2 + $0x98] sm:$0x3] }
  0x45   : > { %1066 = vmatpush.bf16.msrb.mxu2 %v1905_v2  ;;  %v1207_v32 = vrot.slane %v282_v57, 2 }
  0x46   : > { %1175 = vmatpush.bf16.msrb.mxu3 %v1913_v39 }
  0x48   : > { %505 = vmatpush.bf16.msrb.mxu1 %v1856_v12  ;;  %854 = vmatpush.bf16.msrb.mxu0 %v1888_v16  ;;  %v774_v12 = vrot.slane %v2393_v11, 1 }
  0x49   : > { %1067 = vmatpush.bf16.msrb.mxu2 %v1904_v3 }
  0x4a   : > { %1176 = vmatpush.bf16.msrb.mxu3 %v1912_v14  ;;  %v776_v36 = vsel %vm319_vm0, %v774_v12, %v775_v46 }
  0x4b   : > { %506 = vmatmul.bf16.vlgmr.msrb.gmra.mxu1 %v283_v23  ;;  %v781_v13 = vpack.c.bf16 %v776_v36, %v2242_v40 }
  0x4c   : > { %957 = vmatpush.bf16.msra.mxu1 %v1903_v15  ;;  %1276 = vmatpush.bf16.msra.mxu0 %v1927_v21  ;;  %v994_v15 = vpack.c.bf16 0.0, %v2393_v11 }
  0x4d   : > { %855 = vmatmul.bf16.vlgmr.msrb.gmra.mxu0 %v778_v30  ;;  %1955 = vmatpush.bf16.msra.mxu2 %v1927_v21 }
  0x4e   : > { %647 = vmatmul.bf16.gmra.mxu2 %v2342_v31 }
  0x4f   : > { %753 = vmatmul.bf16.gmra.mxu3 %v668_v33 }
  0x50   : > { %958 = vmatpush.bf16.msra.mxu1 %v1902_v28  ;;  %1277 = vmatpush.bf16.msra.mxu0 %v1926_v24 }
  0x51   : > { %1956 = vmatpush.bf16.msra.mxu2 %v1926_v24 }
  0x54   : > { %959 = vmatpush.bf16.msra.mxu1 %v1901_v55  ;;  %1278 = vmatpush.bf16.msra.mxu0 %v1925_v37 }
  0x55   : > { %1957 = vmatpush.bf16.msra.mxu2 %v1925_v37 }
  0x58   : > { %960 = vmatpush.bf16.msra.mxu1 %v1900_v38  ;;  %1279 = vmatpush.bf16.msra.mxu0 %v1924_v43 }
  0x59   : > { %1958 = vmatpush.bf16.msra.mxu2 %v1924_v43 }
  0x5b   : > { %511 = vmatmul.bf16.gmra.mxu1 %v284_v52 }
  0x5c   : > { %961 = vmatpush.bf16.msra.mxu1 %v1899_v50  ;;  %1280 = vmatpush.bf16.msra.mxu0 %v1923_v45 }
  0x5d   : > { %860 = vmatmul.bf16.gmra.mxu0 %v779_v58  ;;  %1959 = vmatpush.bf16.msra.mxu2 %v1923_v45 }
  0x5e   : > { %652 = vmatmul.bf16.gmra.mxu2 %v2399_v61 }
  0x5f   : > { %758 = vmatmul.bf16.gmra.mxu3 %v669_v29 }
  0x60   : > { %962 = vmatpush.bf16.msra.mxu1 %v1898_v6  ;;  %1281 = vmatpush.bf16.msra.mxu0 %v1922_v54 }
  0x61   : > { %1960 = vmatpush.bf16.msra.mxu2 %v1922_v54 }
  0x64   : > { %963 = vmatpush.bf16.msra.mxu1 %v1897_v62  ;;  %1282 = vmatpush.bf16.msra.mxu0 %v1921_v63 }
  0x65   : > { %1961 = vmatpush.bf16.msra.mxu2 %v1921_v63 }
  0x68   : > { %964 = vmatpush.bf16.msra.mxu1 %v1896_v10  ;;  %1283 = vmatpush.bf16.msra.mxu0 %v1920_v5 }
  0x69   : > { %1962 = vmatpush.bf16.msra.mxu2 %v1920_v5 }
  0x6b   : > { %516 = vmatmul.bf16.gmra.mxu1 %v2303_v9 }
  0x6d   : > { %865 = vmatmul.bf16.gmra.mxu0 %v780_v0 }
  0x6e   : > { %1068 = vmatmul.bf16.vlgmr.msrb.gmra.mxu2 %v284_v52 }
  0x6f   : > { %1177 = vmatmul.bf16.vlgmr.msrb.gmra.mxu3 %v2272_v59  ;;  %v1100_v59 = vrot.slane %v282_v57, 1 }
  0x71   : > { %v1101_v40 = vsel %vm319_vm0, %v2129_v41, %v1100_v59  ;;  %v1208_v41 = vsel %vm527_vm1, %v2132_v42, %v1207_v32 }
  0x7b   : > { %521 = vmatmul.bf16.gmra.mxu1 %v2364_v26 }
  0x7d   : > { %870 = vmatmul.bf16.gmra.mxu0 %v781_v13 }
  0x7e   : > { %1073 = vmatmul.bf16.gmra.mxu2 %v2303_v9  ;;  %v1103_v9 = vpack.c.bf16 %v1101_v40, %v776_v36 }
  0x7f   : > { %1182 = vmatmul.bf16.gmra.mxu3 %v2160_v53  ;;  %v884_v53 = vrot.slane %v2393_v11, 2 }
  0x8b   : > { %965 = vmatmul.bf16.vlgmr.msra.gmra.mxu1 %v888_v34  ;;  %v890_v34 = vpack.c.bf16 %v2385_v56, %v2334_v27 }
  0x8d   : > { %1284 = vmatmul.bf16.vlgmr.msra.gmra.mxu0 %v2276_v60 }
  0x8e   : > { %1078 = vmatmul.bf16.gmra.mxu2 %v2364_v26 }
  0x8f   : > { %1187 = vmatmul.bf16.gmra.mxu3 %v2256_v51  ;;  %v886_v51 = vsel %vm527_vm1, %v884_v53, %v885_v4 }
  0x90   : > { %v1210_v16 = vpack.c.bf16 %v1208_v41, %v886_v51  ;;  %v891_v22 = vpack.c.bf16 %v886_v51, %v2388_v1 }
  0x9b   : > { %970 = vmatmul.bf16.gmra.mxu1 %v889_v7 }
  0x9d   : > { %1289 = vmatmul.bf16.gmra.mxu0 %v2342_v31 }
  0x9e   : > { %1083 = vmatmul.bf16.gmra.mxu2 %v994_v15 }
  0x9f   : > { %1192 = vmatmul.bf16.gmra.mxu3 %v1103_v9 }
  0xa8   : > { %v440_v60 = vpop.f32.mrf.mxu1 }
  0xaa   : > { %v430_v17 = vpop.f32.mrf.mxu0 }
  0xab   : > { %975 = vmatmul.bf16.gmra.mxu1 %v890_v34 }
  0xad   : > { %1294 = vmatmul.bf16.gmra.mxu0 %v2399_v61 }
  0xae   : > { %1299 = vmatmul.bf16.vlgmr.msra.gmra.mxu2 %v1210_v16 }
  0xb0   : > { %v442_v18 = vpop.f32.mrf.mxu1 }
  0xb1   : > { %v638_v19 = vpop.f32.mrf.mxu2 }
  0xb2   : > { %v432_v20 = vpop.f32.mrf.mxu0  ;;  %v744_v21 = vpop.f32.mrf.mxu3 }
  0xb8   : > { %v445_v28 = vpop.f32.mrf.mxu1 }
  0xb9   : > { %v640_v23 = vpop.f32.mrf.mxu2 }
  0xba   : > { %v435_v25 = vpop.f32.mrf.mxu0  ;;  %v746_v27 = vpop.f32.mrf.mxu3 }
  0xbb   : > { %980 = vmatmul.bf16.gmra.mxu1 %v891_v22 }
  0xc0   : > { %v447_v24 = vpop.f32.mrf.mxu1 }
  0xc1   : > { %v643_v42 = vpop.f32.mrf.mxu2 }
  0xc2   : > { %v437_v30 = vpop.f32.mrf.mxu0  ;;  %v2455_v31 = vpop.f32.mrf.mxu3 }
  0xc8   : > { %v507_v2 = vpop.f32.mrf.mxu1 }
  0xc9   : > { %v508_v55 = vadd.f32 %v507_v2, %v430_v17  ;;  %v645_v33 = vpop.f32.mrf.mxu2 }
  0xca   : > { %v856_v35 = vpop.f32.mrf.mxu0  ;;  %v2457_v37 = vpop.f32.mrf.mxu3 }
  0xcb   : > { %v658_v3 = vadd.f32 %v638_v19, %v508_v55 }
  0xcd   : > { %v764_v32 = vadd.f32 %v744_v21, %v658_v3 }
  0xcf   : > { %v876_v41 = vadd.f32 %v856_v35, %v764_v32 }
  0xd0   : > { %v509_v26 = vpop.f32.mrf.mxu1 }
  0xd1   : > { %v510_v38 = vadd.f32 %v509_v26, %v432_v20  ;;  %v648_v39 = vpop.f32.mrf.mxu2 }
  0xd2   : > { %v858_v44 = vpop.f32.mrf.mxu0  ;;  %v2459_v47 = vpop.f32.mrf.mxu3 }
  0xd3   : > { %v659_v43 = vadd.f32 %v640_v23, %v510_v38 }
  0xd5   : > { %v765_v19 = vadd.f32 %v746_v27, %v659_v43 }
  0xd7   : > { %v877_v23 = vadd.f32 %v858_v44, %v765_v19 }
  0xd8   : > { %v512_v48 = vpop.f32.mrf.mxu1 }
  0xd9   : > { %v513_v49 = vadd.f32 %v512_v48, %v435_v25  ;;  %v650_v50 = vpop.f32.mrf.mxu2  ;;  %v1326_v48 = vld [vmem:[%s2489_s24 + $0x8] sm:$0xff] }
  0xda   : > { %v861_v56 = vpop.f32.mrf.mxu0  ;;  %v2461_v6 = vpop.f32.mrf.mxu3 }
  0xdb   : > { %v660_v52 = vadd.f32 %v643_v42, %v513_v49 }
  0xdd   : > { %v766_v55 = vadd.f32 %v2455_v31, %v660_v52 }
  0xdf   : > { %v878_v43 = vadd.f32 %v861_v56, %v766_v55 }
  0xe0   : > { %v514_v1 = vpop.f32.mrf.mxu1 }
  0xe1   : > { %v515_v11 = vadd.f32 %v514_v1, %v437_v30  ;;  %v653_v58 = vpop.f32.mrf.mxu2 }
  0xe2   : > { %v2463_v14 = vpop.f32.mrf.mxu0  ;;  %v2465_v10 = vpop.f32.mrf.mxu3 }
  0xe3   : > { %v661_v61 = vadd.f32 %v645_v33, %v515_v11 }
  0xe5   : > { %v767_v52 = vadd.f32 %v2457_v37, %v661_v61 }
  0xe7   : > { %v879_v56 = vadd.f32 %v2463_v14, %v767_v52 }
  0xe8   : > { %v517_v29 = vpop.f32.mrf.mxu1 }
  0xe9   : > { %v518_v62 = vadd.f32 %v517_v29, %v440_v60  ;;  %v655_v45 = vpop.f32.mrf.mxu2 }
  0xea   : > { %v2469_v63 = vpop.f32.mrf.mxu0  ;;  %v2475_v46 = vpop.f32.mrf.mxu3 }
  0xeb   : > { %v2467_v54 = vadd.f32 %v648_v39, %v518_v62 }
  0xed   : > { %v768_v37 = vadd.f32 %v2459_v47, %v2467_v54 }
  0xef   : > { %v880_v14 = vadd.f32 %v2469_v63, %v768_v37 }
  0xf0   : > { %v519_v0 = vpop.f32.mrf.mxu1 }
  0xf1   : > { %v520_v5 = vadd.f32 %v519_v0, %v442_v18  ;;  %v1069_v7 = vpop.f32.mrf.mxu2 }
  0xf2   : > { %v2473_v12 = vpop.f32.mrf.mxu0  ;;  %v1178_v15 = vpop.f32.mrf.mxu3 }
  0xf3   : > { %v2471_v8 = vadd.f32 %v650_v50, %v520_v5 }
  0xf5   : > { %v769_v47 = vadd.f32 %v2461_v6, %v2471_v8 }
  0xf8   : > { %v522_v36 = vpop.f32.mrf.mxu1 }
  0xf9   : > { %v523_v13 = vadd.f32 %v522_v36, %v445_v28  ;;  %v1071_v57 = vpop.f32.mrf.mxu2  ;;  %v2494_v28 = vld [vmem:[%s2545_s2] ss:$0 sm:$0xff] }
  0xfa   : > { %v2479_v40 = vpop.f32.mrf.mxu0  ;;  %v1180_v16 = vpop.f32.mrf.mxu3 }
  0xfb   : > { %v2477_v59 = vadd.f32 %v653_v58, %v523_v13 }
  0xfd   : > { %v770_v6 = vadd.f32 %v2465_v10, %v2477_v59 }
 0x100   : > { %v524_v9 = vpop.f32.mrf.mxu1 }
 0x101   : > { %v525_v53 = vadd.f32 %v524_v9, %v447_v24  ;;  %v1074_v4 = vpop.f32.mrf.mxu2  ;;  %v1325_v24 = vld [vmem:[%s2489_s24] sm:$0xff] }
 0x102   : > { %v2483_v51 = vpop.f32.mrf.mxu0  ;;  %v1183_v2 = vpop.f32.mrf.mxu3 }
 0x103   : > { %v2481_v34 = vadd.f32 %v655_v45, %v525_v53 }
 0x105   : > { %v771_v10 = vadd.f32 %v2475_v46, %v2481_v34 }
 0x108   : > { %v966_v60 = vpop.f32.mrf.mxu1 }
 0x109   : > { %v986_v17 = vadd.f32 %v966_v60, %v876_v41  ;;  %v1076_v18 = vpop.f32.mrf.mxu2 }
 0x10a   : > { %v1285_v22 = vpop.f32.mrf.mxu0  ;;  %v1185_v29 = vpop.f32.mrf.mxu3 }
 0x10b   : > { %v1089_v20 = vadd.f32 %v1069_v7, %v986_v17  ;;  %v1327_v7 = vld [vmem:[%s2489_s24 + $0x10] sm:$0xff] }
 0x10d   : > { %v1198_v21 = vadd.f32 %v1178_v15, %v1089_v20 }
 0x10f   : > { %v1305_v25 = vadd.f32 %v1285_v22, %v1198_v21 }
 0x110   : > { %v968_v42 = vpop.f32.mrf.mxu1 }
 0x111   : > { %v1317_v27 = vadd.f32 %v2494_v28, %v1305_v25  ;;  %v987_v30 = vadd.f32 %v968_v42, %v877_v23  ;;  %v1079_v26 = vpop.f32.mrf.mxu2  ;;  %v881_v25 = vadd.f32 %v2473_v12, %v769_v47  ;;  %v1329_v42 = vld [vmem:[%s2489_s24 + $0x20] sm:$0xff]  ;;  %v882_v12 = vadd.f32 %v2479_v40, %v770_v6 }
 0x112   : > { %v1287_v35 = vpop.f32.mrf.mxu0  ;;  %v1188_v32 = vpop.f32.mrf.mxu3  ;;  %v883_v40 = vadd.f32 %v2483_v51, %v771_v10 }
 0x113   : > { %v1333_v33 = vadd.f32 %v1325_v24, %v1317_v27  ;;  %v1090_v3 = vadd.f32 %v1071_v57, %v987_v30 }
 0x115   : > { %v1341_v38 = vmax.f32 %v1333_v33, 0.0  ;;  %v1199_v39 = vadd.f32 %v1180_v16, %v1090_v3  ;;  %v1328_v16 = vld [vmem:[%s2489_s24 + $0x18] sm:$0xff] }
 0x117   : > { %1349 = vst [vmem:[%s2502_s28] sm:$0xff] %v1341_v38  ;;  %v1306_v44 = vadd.f32 %v1287_v35, %v1199_v39  ;;  %v1330_v39 = vld [vmem:[%s2489_s24 + $0x28] sm:$0xff] }
 0x118   : > { %v971_v49 = vpop.f32.mrf.mxu1 }
 0x119   : > { %v1318_v31 = vadd.f32 %v2494_v28, %v1306_v44  ;;  %v988_v50 = vadd.f32 %v971_v49, %v878_v43  ;;  %v1081_v0 = vpop.f32.mrf.mxu2 }
 0x11a   : > { %v1290_v58 = vpop.f32.mrf.mxu0  ;;  %v1190_v24 = vpop.f32.mrf.mxu3 }
 0x11b   : > { %v1334_v1 = vadd.f32 %v1326_v48, %v1318_v31  ;;  %v1091_v11 = vadd.f32 %v1074_v4, %v988_v50 }
 0x11d   : > { %v1342_v62 = vmax.f32 %v1334_v1, 0.0  ;;  %v1200_v45 = vadd.f32 %v1183_v2, %v1091_v11 }
 0x11f   : > { %1350 = vst [vmem:[%s2502_s28 + $0x8] sm:$0xff] %v1342_v62  ;;  %v1307_v5 = vadd.f32 %v1290_v58, %v1200_v45  ;;  %v1331_v58 = vld [vmem:[%s2489_s24 + $0x30] sm:$0xff] }
 0x120   : > { %v973_v36 = vpop.f32.mrf.mxu1 }
 0x121   : > { %v1319_v13 = vadd.f32 %v2494_v28, %v1307_v5  ;;  %v989_v57 = vadd.f32 %v973_v36, %v879_v56  ;;  %v1084_v60 = vpop.f32.mrf.mxu2 }
 0x122   : > { %v1292_v9 = vpop.f32.mrf.mxu0  ;;  %v1193_v49 = vpop.f32.mrf.mxu3 }
 0x123   : > { %v1335_v61 = vadd.f32 %v1327_v7, %v1319_v13  ;;  %v1092_v15 = vadd.f32 %v1076_v18, %v989_v57  ;;  %v1332_v13 = vld [vmem:[%s2489_s24 + $0x38] sm:$0xff] }
 0x125   : > { %v1343_v53 = vmax.f32 %v1335_v61, 0.0  ;;  %v1201_v4 = vadd.f32 %v1185_v29, %v1092_v15 }
 0x127   : > { %1351 = vst [vmem:[%s2502_s28 + $0x10] sm:$0xff] %v1343_v53  ;;  %v1308_v41 = vadd.f32 %v1292_v9, %v1201_v4 }
 0x128   : > { %v976_v17 = vpop.f32.mrf.mxu1 }
 0x129   : > { %v1320_v19 = vadd.f32 %v2494_v28, %v1308_v41  ;;  %v990_v20 = vadd.f32 %v976_v17, %v880_v14  ;;  %v1086_v55 = vpop.f32.mrf.mxu2 }
 0x12a   : > { %v1295_v22 = vpop.f32.mrf.mxu0  ;;  %v1195_v46 = vpop.f32.mrf.mxu3 }
 0x12b   : > { %v1336_v54 = vadd.f32 %v1328_v16, %v1320_v19  ;;  %v1093_v18 = vadd.f32 %v1079_v26, %v990_v20 }
 0x12d   : > { %v1344_v21 = vmax.f32 %v1336_v54, 0.0  ;;  %v1202_v23 = vadd.f32 %v1188_v32, %v1093_v18 }
 0x12f   : > { %1352 = vst [vmem:[%s2502_s28 + $0x18] sm:$0xff] %v1344_v21  ;;  %v1309_v63 = vadd.f32 %v1295_v22, %v1202_v23 }
 0x130   : > { %v978_v27 = vpop.f32.mrf.mxu1 }
 0x131   : > { %v1321_v30 = vadd.f32 %v2494_v28, %v1309_v63  ;;  %v991_v2 = vadd.f32 %v978_v27, %v881_v25  ;;  %v1300_v50 = vpop.f32.mrf.mxu2 }
 0x132   : > { %v1297_v3 = vpop.f32.mrf.mxu0 }
 0x133   : > { %v1337_v8 = vadd.f32 %v1329_v42, %v1321_v30  ;;  %v1094_v33 = vadd.f32 %v1081_v0, %v991_v2 }
 0x135   : > { %v1345_v35 = vmax.f32 %v1337_v8, 0.0  ;;  %v1203_v26 = vadd.f32 %v1190_v24, %v1094_v33 }
 0x137   : > { %1353 = vst [vmem:[%s2502_s28 + $0x20] sm:$0xff] %v1345_v35  ;;  %v1310_v38 = vadd.f32 %v1297_v3, %v1203_v26 }
 0x138   : > { %v981_v43 = vpop.f32.mrf.mxu1 }
 0x139   : > { %v1322_v44 = vadd.f32 %v2494_v28, %v1310_v38  ;;  %v992_v48 = vadd.f32 %v981_v43, %v882_v12  ;;  %v1302_v7 = vpop.f32.mrf.mxu2 }
 0x13b   : > { %v1338_v59 = vadd.f32 %v1330_v39, %v1322_v44  ;;  %v1095_v31 = vadd.f32 %v1084_v60, %v992_v48 }
 0x13d   : > { %v1346_v52 = vmax.f32 %v1338_v59, 0.0  ;;  %v1204_v1 = vadd.f32 %v1193_v49, %v1095_v31 }
 0x13f   : > { %1354 = vst [vmem:[%s2502_s28 + $0x28] sm:$0xff] %v1346_v52  ;;  %v1311_v11 = vadd.f32 %v1300_v50, %v1204_v1 }
 0x140   : > { %v983_v29 = vpop.f32.mrf.mxu1 }
 0x141   : > { %v1323_v62 = vadd.f32 %v2494_v28, %v1311_v11  ;;  %v993_v45 = vadd.f32 %v983_v29, %v883_v40 }
 0x143   : > { %v1339_v0 = vadd.f32 %v1331_v58, %v1323_v62  ;;  %v1096_v56 = vadd.f32 %v1086_v55, %v993_v45 }
 0x145   : > { %v1347_v34 = vmax.f32 %v1339_v0, 0.0  ;;  %v1205_v5 = vadd.f32 %v1195_v46, %v1096_v56 }
 0x147   : > { %1355 = vst [vmem:[%s2502_s28 + $0x30] sm:$0xff] %v1347_v34  ;;  %v1312_v36 = vadd.f32 %v1302_v7, %v1205_v5 }
 0x149   : > { %v1324_v57 = vadd.f32 %v2494_v28, %v1312_v36 }
 0x14b   : > { %v1340_v51 = vadd.f32 %v1332_v13, %v1324_v57 }
 0x14d   : > { %v1348_v37 = vmax.f32 %v1340_v51, 0.0 }
 0x14f   : > { %1356 = vst [vmem:[%s2502_s28 + $0x38] sm:$0xff] %v1348_v37 }
 0x150 PF: > { %s14_s15 = sadd.s32 1, %s1979_s15  }
 0x151   : > { %p11_p4 = scmp.ge.s32.totalorder %s14_s15, 4  }
 0x153   :  { %13 = sbr.rel (!%p11_p4) target bundleno = 1 (0x1), region = 78 }

</bundles_post_ra>
